<compile_context>
chip_gen: v7x
topology: tpu7x:2x2x1
jax: 0.10.0
libtpu: 0.0.40
codegen_flags: <defaults>
</compile_context>

<pallas_src>
import jax
import jax.numpy as jnp
from jax.experimental import pallas as pl
from jax.experimental.pallas import tpu as pltpu


# ----------------------------- Pallas kernel -------------------------------

def _lstm_embedder_kernel(x_ref, len_ref, wih_ref, whh_ref, b_ref, o_ref):
    T = x_ref.shape[0]
    bm = x_ref.shape[1]
    n_layers, hidden, _ = whh_ref.shape

    # Hoist the bf16 -> f32 widening out of the time loop (done once).
    wih = wih_ref[...].astype(jnp.float32)    # [L, 64, 4H]
    whh = whh_ref[...].astype(jnp.float32)    # [L, H, 4H]
    bias = b_ref[...]                         # [L, 4H] f32 (b_ih + b_hh folded)
    lens = len_ref[...]                       # [bm, 1] int32

    def sigmoid(v):
        # Exact identity sigmoid(v) = 0.5*(tanh(v/2)+1); guaranteed EUP lowering.
        return 0.5 * (jnp.tanh(0.5 * v) + 1.0)

    def step(t, carry):
        hs, cs, out = carry
        inp = x_ref[t]                        # [bm, 64] f32 (dynamic leading idx)
        new_hs, new_cs = [], []
        for l in range(n_layers):             # static unroll over layers
            gates = (jnp.dot(inp, wih[l], preferred_element_type=jnp.float32)
                     + jnp.dot(hs[l], whh[l], preferred_element_type=jnp.float32)
                     + bias[l])                                  # [bm, 4H]
            i_g = sigmoid(gates[:, 0 * hidden:1 * hidden])       # PyTorch gate
            f_g = sigmoid(gates[:, 1 * hidden:2 * hidden])       # order: i,f,g,o
            g_g = jnp.tanh(gates[:, 2 * hidden:3 * hidden])
            o_g = sigmoid(gates[:, 3 * hidden:4 * hidden])
            c_new = f_g * cs[l] + i_g * g_g
            h_new = o_g * jnp.tanh(c_new)
            new_hs.append(h_new)
            new_cs.append(c_new)
            inp = h_new
        # packed-seq equivalent of padded_out[arange(B), lengths - 1]
        is_last = lens == (t + 1)                                # [bm, 1] bool
        out = jnp.where(is_last, new_hs[-1], out)
        return tuple(new_hs), tuple(new_cs), out

    zeros = jnp.zeros((bm, hidden), jnp.float32)
    init = (tuple(zeros for _ in range(n_layers)),
            tuple(zeros for _ in range(n_layers)),
            zeros)
    _, _, emb = jax.lax.fori_loop(0, T, step, init)

    # F.normalize(emb, dim=1) == emb / max(||emb||, 1e-12), via EUP rsqrt.
    sumsq = jnp.sum(emb * emb, axis=-1, keepdims=True)
    o_ref[...] = emb * jax.lax.rsqrt(jnp.maximum(sumsq, jnp.float32(1e-24)))


# ------------------------------- wrapper ------------------------------------

def lstm_embedder(traces, lengths, params, *, block_b=None):
    """traces: [B, T, in_dim] float32; lengths: [B] int32 (1 <= len <= T)."""
    wih, whh, bias = params
    B, T, in_dim = traces.shape
    n_layers, in_pad, four_h = wih.shape
    hidden = four_h // 4
    assert in_dim <= in_pad

    # Glue preprocessing (plain JAX): pad features to the stacked-weight input
    # width and go time-major so the kernel can index x_ref[t].
    x = jnp.zeros((B, T, in_pad), jnp.float32).at[:, :, :in_dim].set(traces)
    x_tm = jnp.transpose(x, (1, 0, 2))                 # [T, B, in_pad]
    lens2d = lengths.astype(jnp.int32).reshape(B, 1)   # [B, 1]

    if block_b is None:
        block_b = B if B <= 256 else 256
    assert B % block_b == 0 and (block_b == B or block_b % 8 == 0)
    grid = (B // block_b,)

    return pl.pallas_call(
        _lstm_embedder_kernel,
        out_shape=jax.ShapeDtypeStruct((B, hidden), jnp.float32),
        grid_spec=pltpu.PrefetchScalarGridSpec(
            num_scalar_prefetch=0,
            grid=grid,
            in_specs=[
                pl.BlockSpec((T, block_b, in_pad), lambda i: (0, i, 0)),  # x
                pl.BlockSpec((block_b, 1), lambda i: (i, 0)),             # lens
                pl.BlockSpec(wih.shape, lambda i: (0, 0, 0)),   # VMEM-resident
                pl.BlockSpec(whh.shape, lambda i: (0, 0, 0)),   # VMEM-resident
                pl.BlockSpec(bias.shape, lambda i: (0, 0)),     # VMEM-resident
            ],
            out_specs=pl.BlockSpec((block_b, hidden), lambda i: (i, 0)),
        ),
        compiler_params=pltpu.CompilerParams(
            dimension_semantics=("parallel",),
            vmem_limit_bytes=16 << 20,
        ),
    )(x_tm, lens2d, wih, whh, bias)


# ----------------------- deterministic parameter init ----------------------

def init_params(key, in_dim=5, hidden=64, n_layers=4, weight_dtype=jnp.bfloat16):
    """PyTorch LSTM default init: U(-k, k), k = 1/sqrt(hidden)."""
    k = 1.0 / float(hidden) ** 0.5
    keys = jax.random.split(key, 4 * n_layers)
    ki = iter(keys)
    wih_l, whh_l, b_l = [], [], []
    for l in range(n_layers):
        d_in = in_dim if l == 0 else hidden
        w_ih = jax.random.uniform(next(ki), (d_in, 4 * hidden), jnp.float32, -k, k)
        # zero-pad layer-0 input rows to `hidden` so all layers stack uniformly
        w_ih = jnp.zeros((hidden, 4 * hidden), jnp.float32).at[:d_in].set(w_ih)
        w_hh = jax.random.uniform(next(ki), (hidden, 4 * hidden), jnp.float32, -k, k)
        b_ih = jax.random.uniform(next(ki), (4 * hidden,), jnp.float32, -k, k)
        b_hh = jax.random.uniform(next(ki), (4 * hidden,), jnp.float32, -k, k)
        wih_l.append(w_ih)
        whh_l.append(w_hh)
        b_l.append(b_ih + b_hh)            # fold the two biases
    wih = jnp.stack(wih_l).astype(weight_dtype)   # [L, hidden, 4H] bf16
    whh = jnp.stack(whh_l).astype(weight_dtype)   # [L, hidden, 4H] bf16
    bias = jnp.stack(b_l)                         # [L, 4H] f32
    return wih, whh, bias


# --------------------------- pure-JAX reference -----------------------------

def reference(traces, lengths, params):
    wih, whh, bias = params
    wih = wih.astype(jnp.float32)
    whh = whh.astype(jnp.float32)
    B, T, in_dim = traces.shape
    n_layers, hidden, _ = whh.shape

    def sigmoid(v):
        return 0.5 * (jnp.tanh(0.5 * v) + 1.0)

    x = jnp.zeros((B, T, hidden), jnp.float32).at[:, :, :in_dim].set(traces)
    hs = [jnp.zeros((B, hidden), jnp.float32) for _ in range(n_layers)]
    cs = [jnp.zeros((B, hidden), jnp.float32) for _ in range(n_layers)]
    outs = []
    for t in range(T):
        inp = x[:, t]
        for l in range(n_layers):
            gates = inp @ wih[l] + hs[l] @ whh[l] + bias[l]
            i_g = sigmoid(gates[:, :hidden])
            f_g = sigmoid(gates[:, hidden:2 * hidden])
            g_g = jnp.tanh(gates[:, 2 * hidden:3 * hidden])
            o_g = sigmoid(gates[:, 3 * hidden:])
            cs[l] = f_g * cs[l] + i_g * g_g
            hs[l] = o_g * jnp.tanh(cs[l])
            inp = hs[l]
        outs.append(hs[-1])
    out_seq = jnp.stack(outs, axis=1)                    # [B, T, hidden]
    emb = out_seq[jnp.arange(B), lengths - 1]            # last valid step
    n = jnp.sqrt(jnp.sum(emb * emb, axis=-1, keepdims=True))
    return emb / jnp.maximum(n, 1e-12)


# ------------------------------------ main ----------------------------------

if __name__ == "__main__":
    key = jax.random.PRNGKey(0)
    kx, kl, kp = jax.random.split(key, 3)

    # Shapes implied by the module: in_dim=5, out_dim=64, n_layers=4.
    B, T, IN = 4, 8, 5
    traces = jax.random.normal(kx, (B, T, IN), jnp.float32)
    lengths = jax.random.randint(kl, (B,), 2, T + 1).astype(jnp.int32)
    params = init_params(kp, in_dim=IN, hidden=64, n_layers=4)

    out = jax.block_until_ready(lstm_embedder(traces, lengths, params))
    ref = reference(traces, lengths, params)

    assert out.shape == (B, 64)
    assert bool(jnp.allclose(out, ref, atol=2e-3, rtol=2e-3)), "mismatch vs reference"
    print("KERNEL_OK")
</pallas_src>

<mosaic_0001>
module attributes {stable_mosaic.version = 11 : i64} {
  func.func @_lstm_embedder_kernel(%arg0: i32, %arg1: memref<8x4x64xf32, #tpu.memory_space<vmem>>, %arg2: memref<4x1xi32, #tpu.memory_space<vmem>>, %arg3: memref<4x64x256xbf16, #tpu.memory_space<vmem>>, %arg4: memref<4x64x256xbf16, #tpu.memory_space<vmem>>, %arg5: memref<4x256xf32, #tpu.memory_space<vmem>>, %arg6: memref<4x64xf32, #tpu.memory_space<vmem>>) attributes {dimension_semantics = [#tpu.dimension_semantics<parallel>], iteration_bounds = array<i64: 1>, scalar_prefetch = 0 : i64, scratch_operands = 0 : i64, tpu.core_type = #tpu.core_type<tc>, window_params = [{transform_indices = @transform_0, window_bounds = array<i64: 8, 4, 64>}, {transform_indices = @transform_1, window_bounds = array<i64: 4, 1>}, {pipeline_mode = #tpu.pipeline_mode<synchronous>, transform_indices = @transform_2, window_bounds = array<i64: 4, 64, 256>}, {pipeline_mode = #tpu.pipeline_mode<synchronous>, transform_indices = @transform_3, window_bounds = array<i64: 4, 64, 256>}, {pipeline_mode = #tpu.pipeline_mode<synchronous>, transform_indices = @transform_4, window_bounds = array<i64: 4, 256>}, {transform_indices = @transform_5, window_bounds = array<i64: 4, 64>}]} {
    %c0 = arith.constant 0 : index
    %c0_0 = arith.constant 0 : index
    %c0_1 = arith.constant 0 : index
    %0 = vector.load %arg3[%c0, %c0_0, %c0_1] : memref<4x64x256xbf16, #tpu.memory_space<vmem>>, vector<4x64x256xbf16>
    %1 = arith.extf %0 : vector<4x64x256xbf16> to vector<4x64x256xf32>
    %c0_2 = arith.constant 0 : index
    %c0_3 = arith.constant 0 : index
    %c0_4 = arith.constant 0 : index
    %2 = vector.load %arg4[%c0_2, %c0_3, %c0_4] : memref<4x64x256xbf16, #tpu.memory_space<vmem>>, vector<4x64x256xbf16>
    %3 = arith.extf %2 : vector<4x64x256xbf16> to vector<4x64x256xf32>
    %c0_5 = arith.constant 0 : index
    %c0_6 = arith.constant 0 : index
    %4 = vector.load %arg5[%c0_5, %c0_6] : memref<4x256xf32, #tpu.memory_space<vmem>>, vector<4x256xf32>
    %c0_7 = arith.constant 0 : index
    %c0_8 = arith.constant 0 : index
    %5 = vector.load %arg2[%c0_7, %c0_8] : memref<4x1xi32, #tpu.memory_space<vmem>>, vector<4x1xi32>
    %cst = arith.constant 0.000000e+00 : f32
    %6 = vector.broadcast %cst : f32 to vector<4x64xf32>
    %c0_i32 = arith.constant 0 : i32
    %c8_i32 = arith.constant 8 : i32
    %7 = arith.addi %c0_i32, %c8_i32 : i32
    %c1_i32 = arith.constant 1 : i32
    %8:9 = scf.for %arg7 = %c0_i32 to %7 step %c1_i32 iter_args(%arg8 = %6, %arg9 = %6, %arg10 = %6, %arg11 = %6, %arg12 = %6, %arg13 = %6, %arg14 = %6, %arg15 = %6, %arg16 = %6) -> (vector<4x64xf32>, vector<4x64xf32>, vector<4x64xf32>, vector<4x64xf32>, vector<4x64xf32>, vector<4x64xf32>, vector<4x64xf32>, vector<4x64xf32>, vector<4x64xf32>)  : i32 {
      %18 = arith.index_cast %arg7 : i32 to index
      %c0_14 = arith.constant 0 : index
      %c0_15 = arith.constant 0 : index
      %19 = vector.load %arg1[%18, %c0_14, %c0_15] : memref<8x4x64xf32, #tpu.memory_space<vmem>>, vector<1x4x64xf32>
      %20 = vector.shape_cast %19 : vector<1x4x64xf32> to vector<4x64xf32>
      %21 = vector.extract_strided_slice %1 {offsets = [0, 0, 0], sizes = [1, 64, 256], strides = [1, 1, 1]} : vector<4x64x256xf32> to vector<1x64x256xf32>
      %22 = vector.shape_cast %21 : vector<1x64x256xf32> to vector<64x256xf32>
      %cst_16 = arith.constant dense<0.000000e+00> : vector<4x256xf32>
      %23 = tpu.matmul %20, %22, %cst_16 {dimension_numbers = #tpu.dot_dimension_numbers<[1], [0], [0], [1], [0, 0, 1, 1], [], []>} : vector<4x64xf32>, vector<64x256xf32>, vector<4x256xf32> -> vector<4x256xf32>
      %24 = vector.extract_strided_slice %3 {offsets = [0, 0, 0], sizes = [1, 64, 256], strides = [1, 1, 1]} : vector<4x64x256xf32> to vector<1x64x256xf32>
      %25 = vector.shape_cast %24 : vector<1x64x256xf32> to vector<64x256xf32>
      %cst_17 = arith.constant dense<0.000000e+00> : vector<4x256xf32>
      %26 = tpu.matmul %arg8, %25, %cst_17 {dimension_numbers = #tpu.dot_dimension_numbers<[1], [0], [0], [1], [0, 0, 1, 1], [], []>} : vector<4x64xf32>, vector<64x256xf32>, vector<4x256xf32> -> vector<4x256xf32>
      %27 = arith.addf %23, %26 : vector<4x256xf32>
      %28 = vector.extract_strided_slice %4 {offsets = [0, 0], sizes = [1, 256], strides = [1, 1]} : vector<4x256xf32> to vector<1x256xf32>
      %29 = vector.shape_cast %28 : vector<1x256xf32> to vector<256xf32>
      %30 = vector.shape_cast %29 : vector<256xf32> to vector<1x256xf32>
      %31 = vector.broadcast %30 : vector<1x256xf32> to vector<4x256xf32>
      %32 = arith.addf %27, %31 : vector<4x256xf32>
      %33 = vector.extract_strided_slice %32 {offsets = [0, 0], sizes = [4, 64], strides = [1, 1]} : vector<4x256xf32> to vector<4x64xf32>
      %cst_18 = arith.constant 5.000000e-01 : f32
      %34 = vector.broadcast %cst_18 : f32 to vector<4x64xf32>
      %35 = arith.mulf %34, %33 : vector<4x64xf32>
      %36 = math.tanh %35 : vector<4x64xf32>
      %cst_19 = arith.constant 1.000000e+00 : f32
      %37 = vector.broadcast %cst_19 : f32 to vector<4x64xf32>
      %38 = arith.addf %36, %37 : vector<4x64xf32>
      %cst_20 = arith.constant 5.000000e-01 : f32
      %39 = vector.broadcast %cst_20 : f32 to vector<4x64xf32>
      %40 = arith.mulf %39, %38 : vector<4x64xf32>
      %41 = vector.extract_strided_slice %32 {offsets = [0, 64], sizes = [4, 64], strides = [1, 1]} : vector<4x256xf32> to vector<4x64xf32>
      %cst_21 = arith.constant 5.000000e-01 : f32
      %42 = vector.broadcast %cst_21 : f32 to vector<4x64xf32>
      %43 = arith.mulf %42, %41 : vector<4x64xf32>
      %44 = math.tanh %43 : vector<4x64xf32>
      %cst_22 = arith.constant 1.000000e+00 : f32
      %45 = vector.broadcast %cst_22 : f32 to vector<4x64xf32>
      %46 = arith.addf %44, %45 : vector<4x64xf32>
      %cst_23 = arith.constant 5.000000e-01 : f32
      %47 = vector.broadcast %cst_23 : f32 to vector<4x64xf32>
      %48 = arith.mulf %47, %46 : vector<4x64xf32>
      %49 = vector.extract_strided_slice %32 {offsets = [0, 128], sizes = [4, 64], strides = [1, 1]} : vector<4x256xf32> to vector<4x64xf32>
      %50 = math.tanh %49 : vector<4x64xf32>
      %51 = vector.extract_strided_slice %32 {offsets = [0, 192], sizes = [4, 64], strides = [1, 1]} : vector<4x256xf32> to vector<4x64xf32>
      %cst_24 = arith.constant 5.000000e-01 : f32
      %52 = vector.broadcast %cst_24 : f32 to vector<4x64xf32>
      %53 = arith.mulf %52, %51 : vector<4x64xf32>
      %54 = math.tanh %53 : vector<4x64xf32>
      %cst_25 = arith.constant 1.000000e+00 : f32
      %55 = vector.broadcast %cst_25 : f32 to vector<4x64xf32>
      %56 = arith.addf %54, %55 : vector<4x64xf32>
      %cst_26 = arith.constant 5.000000e-01 : f32
      %57 = vector.broadcast %cst_26 : f32 to vector<4x64xf32>
      %58 = arith.mulf %57, %56 : vector<4x64xf32>
      %59 = arith.mulf %48, %arg12 : vector<4x64xf32>
      %60 = arith.mulf %40, %50 : vector<4x64xf32>
      %61 = arith.addf %59, %60 : vector<4x64xf32>
      %62 = math.tanh %61 : vector<4x64xf32>
      %63 = arith.mulf %58, %62 : vector<4x64xf32>
      %64 = vector.extract_strided_slice %1 {offsets = [1, 0, 0], sizes = [1, 64, 256], strides = [1, 1, 1]} : vector<4x64x256xf32> to vector<1x64x256xf32>
      %65 = vector.shape_cast %64 : vector<1x64x256xf32> to vector<64x256xf32>
      %cst_27 = arith.constant dense<0.000000e+00> : vector<4x256xf32>
      %66 = tpu.matmul %63, %65, %cst_27 {dimension_numbers = #tpu.dot_dimension_numbers<[1], [0], [0], [1], [0, 0, 1, 1], [], []>} : vector<4x64xf32>, vector<64x256xf32>, vector<4x256xf32> -> vector<4x256xf32>
      %67 = vector.extract_strided_slice %3 {offsets = [1, 0, 0], sizes = [1, 64, 256], strides = [1, 1, 1]} : vector<4x64x256xf32> to vector<1x64x256xf32>
      %68 = vector.shape_cast %67 : vector<1x64x256xf32> to vector<64x256xf32>
      %cst_28 = arith.constant dense<0.000000e+00> : vector<4x256xf32>
      %69 = tpu.matmul %arg9, %68, %cst_28 {dimension_numbers = #tpu.dot_dimension_numbers<[1], [0], [0], [1], [0, 0, 1, 1], [], []>} : vector<4x64xf32>, vector<64x256xf32>, vector<4x256xf32> -> vector<4x256xf32>
      %70 = arith.addf %66, %69 : vector<4x256xf32>
      %71 = vector.extract_strided_slice %4 {offsets = [1, 0], sizes = [1, 256], strides = [1, 1]} : vector<4x256xf32> to vector<1x256xf32>
      %72 = vector.shape_cast %71 : vector<1x256xf32> to vector<256xf32>
      %73 = vector.shape_cast %72 : vector<256xf32> to vector<1x256xf32>
      %74 = vector.broadcast %73 : vector<1x256xf32> to vector<4x256xf32>
      %75 = arith.addf %70, %74 : vector<4x256xf32>
      %76 = vector.extract_strided_slice %75 {offsets = [0, 0], sizes = [4, 64], strides = [1, 1]} : vector<4x256xf32> to vector<4x64xf32>
      %cst_29 = arith.constant 5.000000e-01 : f32
      %77 = vector.broadcast %cst_29 : f32 to vector<4x64xf32>
      %78 = arith.mulf %77, %76 : vector<4x64xf32>
      %79 = math.tanh %78 : vector<4x64xf32>
      %cst_30 = arith.constant 1.000000e+00 : f32
      %80 = vector.broadcast %cst_30 : f32 to vector<4x64xf32>
      %81 = arith.addf %79, %80 : vector<4x64xf32>
      %cst_31 = arith.constant 5.000000e-01 : f32
      %82 = vector.broadcast %cst_31 : f32 to vector<4x64xf32>
      %83 = arith.mulf %82, %81 : vector<4x64xf32>
      %84 = vector.extract_strided_slice %75 {offsets = [0, 64], sizes = [4, 64], strides = [1, 1]} : vector<4x256xf32> to vector<4x64xf32>
      %cst_32 = arith.constant 5.000000e-01 : f32
      %85 = vector.broadcast %cst_32 : f32 to vector<4x64xf32>
      %86 = arith.mulf %85, %84 : vector<4x64xf32>
      %87 = math.tanh %86 : vector<4x64xf32>
      %cst_33 = arith.constant 1.000000e+00 : f32
      %88 = vector.broadcast %cst_33 : f32 to vector<4x64xf32>
      %89 = arith.addf %87, %88 : vector<4x64xf32>
      %cst_34 = arith.constant 5.000000e-01 : f32
      %90 = vector.broadcast %cst_34 : f32 to vector<4x64xf32>
      %91 = arith.mulf %90, %89 : vector<4x64xf32>
      %92 = vector.extract_strided_slice %75 {offsets = [0, 128], sizes = [4, 64], strides = [1, 1]} : vector<4x256xf32> to vector<4x64xf32>
      %93 = math.tanh %92 : vector<4x64xf32>
      %94 = vector.extract_strided_slice %75 {offsets = [0, 192], sizes = [4, 64], strides = [1, 1]} : vector<4x256xf32> to vector<4x64xf32>
      %cst_35 = arith.constant 5.000000e-01 : f32
      %95 = vector.broadcast %cst_35 : f32 to vector<4x64xf32>
      %96 = arith.mulf %95, %94 : vector<4x64xf32>
      %97 = math.tanh %96 : vector<4x64xf32>
      %cst_36 = arith.constant 1.000000e+00 : f32
      %98 = vector.broadcast %cst_36 : f32 to vector<4x64xf32>
      %99 = arith.addf %97, %98 : vector<4x64xf32>
      %cst_37 = arith.constant 5.000000e-01 : f32
      %100 = vector.broadcast %cst_37 : f32 to vector<4x64xf32>
      %101 = arith.mulf %100, %99 : vector<4x64xf32>
      %102 = arith.mulf %91, %arg13 : vector<4x64xf32>
      %103 = arith.mulf %83, %93 : vector<4x64xf32>
      %104 = arith.addf %102, %103 : vector<4x64xf32>
      %105 = math.tanh %104 : vector<4x64xf32>
      %106 = arith.mulf %101, %105 : vector<4x64xf32>
      %107 = vector.extract_strided_slice %1 {offsets = [2, 0, 0], sizes = [1, 64, 256], strides = [1, 1, 1]} : vector<4x64x256xf32> to vector<1x64x256xf32>
      %108 = vector.shape_cast %107 : vector<1x64x256xf32> to vector<64x256xf32>
      %cst_38 = arith.constant dense<0.000000e+00> : vector<4x256xf32>
      %109 = tpu.matmul %106, %108, %cst_38 {dimension_numbers = #tpu.dot_dimension_numbers<[1], [0], [0], [1], [0, 0, 1, 1], [], []>} : vector<4x64xf32>, vector<64x256xf32>, vector<4x256xf32> -> vector<4x256xf32>
      %110 = vector.extract_strided_slice %3 {offsets = [2, 0, 0], sizes = [1, 64, 256], strides = [1, 1, 1]} : vector<4x64x256xf32> to vector<1x64x256xf32>
      %111 = vector.shape_cast %110 : vector<1x64x256xf32> to vector<64x256xf32>
      %cst_39 = arith.constant dense<0.000000e+00> : vector<4x256xf32>
      %112 = tpu.matmul %arg10, %111, %cst_39 {dimension_numbers = #tpu.dot_dimension_numbers<[1], [0], [0], [1], [0, 0, 1, 1], [], []>} : vector<4x64xf32>, vector<64x256xf32>, vector<4x256xf32> -> vector<4x256xf32>
      %113 = arith.addf %109, %112 : vector<4x256xf32>
      %114 = vector.extract_strided_slice %4 {offsets = [2, 0], sizes = [1, 256], strides = [1, 1]} : vector<4x256xf32> to vector<1x256xf32>
      %115 = vector.shape_cast %114 : vector<1x256xf32> to vector<256xf32>
      %116 = vector.shape_cast %115 : vector<256xf32> to vector<1x256xf32>
      %117 = vector.broadcast %116 : vector<1x256xf32> to vector<4x256xf32>
      %118 = arith.addf %113, %117 : vector<4x256xf32>
      %119 = vector.extract_strided_slice %118 {offsets = [0, 0], sizes = [4, 64], strides = [1, 1]} : vector<4x256xf32> to vector<4x64xf32>
      %cst_40 = arith.constant 5.000000e-01 : f32
      %120 = vector.broadcast %cst_40 : f32 to vector<4x64xf32>
      %121 = arith.mulf %120, %119 : vector<4x64xf32>
      %122 = math.tanh %121 : vector<4x64xf32>
      %cst_41 = arith.constant 1.000000e+00 : f32
      %123 = vector.broadcast %cst_41 : f32 to vector<4x64xf32>
      %124 = arith.addf %122, %123 : vector<4x64xf32>
      %cst_42 = arith.constant 5.000000e-01 : f32
      %125 = vector.broadcast %cst_42 : f32 to vector<4x64xf32>
      %126 = arith.mulf %125, %124 : vector<4x64xf32>
      %127 = vector.extract_strided_slice %118 {offsets = [0, 64], sizes = [4, 64], strides = [1, 1]} : vector<4x256xf32> to vector<4x64xf32>
      %cst_43 = arith.constant 5.000000e-01 : f32
      %128 = vector.broadcast %cst_43 : f32 to vector<4x64xf32>
      %129 = arith.mulf %128, %127 : vector<4x64xf32>
      %130 = math.tanh %129 : vector<4x64xf32>
      %cst_44 = arith.constant 1.000000e+00 : f32
      %131 = vector.broadcast %cst_44 : f32 to vector<4x64xf32>
      %132 = arith.addf %130, %131 : vector<4x64xf32>
      %cst_45 = arith.constant 5.000000e-01 : f32
      %133 = vector.broadcast %cst_45 : f32 to vector<4x64xf32>
      %134 = arith.mulf %133, %132 : vector<4x64xf32>
      %135 = vector.extract_strided_slice %118 {offsets = [0, 128], sizes = [4, 64], strides = [1, 1]} : vector<4x256xf32> to vector<4x64xf32>
      %136 = math.tanh %135 : vector<4x64xf32>
      %137 = vector.extract_strided_slice %118 {offsets = [0, 192], sizes = [4, 64], strides = [1, 1]} : vector<4x256xf32> to vector<4x64xf32>
      %cst_46 = arith.constant 5.000000e-01 : f32
      %138 = vector.broadcast %cst_46 : f32 to vector<4x64xf32>
      %139 = arith.mulf %138, %137 : vector<4x64xf32>
      %140 = math.tanh %139 : vector<4x64xf32>
      %cst_47 = arith.constant 1.000000e+00 : f32
      %141 = vector.broadcast %cst_47 : f32 to vector<4x64xf32>
      %142 = arith.addf %140, %141 : vector<4x64xf32>
      %cst_48 = arith.constant 5.000000e-01 : f32
      %143 = vector.broadcast %cst_48 : f32 to vector<4x64xf32>
      %144 = arith.mulf %143, %142 : vector<4x64xf32>
      %145 = arith.mulf %134, %arg14 : vector<4x64xf32>
      %146 = arith.mulf %126, %136 : vector<4x64xf32>
      %147 = arith.addf %145, %146 : vector<4x64xf32>
      %148 = math.tanh %147 : vector<4x64xf32>
      %149 = arith.mulf %144, %148 : vector<4x64xf32>
      %150 = vector.extract_strided_slice %1 {offsets = [3, 0, 0], sizes = [1, 64, 256], strides = [1, 1, 1]} : vector<4x64x256xf32> to vector<1x64x256xf32>
      %151 = vector.shape_cast %150 : vector<1x64x256xf32> to vector<64x256xf32>
      %cst_49 = arith.constant dense<0.000000e+00> : vector<4x256xf32>
      %152 = tpu.matmul %149, %151, %cst_49 {dimension_numbers = #tpu.dot_dimension_numbers<[1], [0], [0], [1], [0, 0, 1, 1], [], []>} : vector<4x64xf32>, vector<64x256xf32>, vector<4x256xf32> -> vector<4x256xf32>
      %153 = vector.extract_strided_slice %3 {offsets = [3, 0, 0], sizes = [1, 64, 256], strides = [1, 1, 1]} : vector<4x64x256xf32> to vector<1x64x256xf32>
      %154 = vector.shape_cast %153 : vector<1x64x256xf32> to vector<64x256xf32>
      %cst_50 = arith.constant dense<0.000000e+00> : vector<4x256xf32>
      %155 = tpu.matmul %arg11, %154, %cst_50 {dimension_numbers = #tpu.dot_dimension_numbers<[1], [0], [0], [1], [0, 0, 1, 1], [], []>} : vector<4x64xf32>, vector<64x256xf32>, vector<4x256xf32> -> vector<4x256xf32>
      %156 = arith.addf %152, %155 : vector<4x256xf32>
      %157 = vector.extract_strided_slice %4 {offsets = [3, 0], sizes = [1, 256], strides = [1, 1]} : vector<4x256xf32> to vector<1x256xf32>
      %158 = vector.shape_cast %157 : vector<1x256xf32> to vector<256xf32>
      %159 = vector.shape_cast %158 : vector<256xf32> to vector<1x256xf32>
      %160 = vector.broadcast %159 : vector<1x256xf32> to vector<4x256xf32>
      %161 = arith.addf %156, %160 : vector<4x256xf32>
      %162 = vector.extract_strided_slice %161 {offsets = [0, 0], sizes = [4, 64], strides = [1, 1]} : vector<4x256xf32> to vector<4x64xf32>
      %cst_51 = arith.constant 5.000000e-01 : f32
      %163 = vector.broadcast %cst_51 : f32 to vector<4x64xf32>
      %164 = arith.mulf %163, %162 : vector<4x64xf32>
      %165 = math.tanh %164 : vector<4x64xf32>
      %cst_52 = arith.constant 1.000000e+00 : f32
      %166 = vector.broadcast %cst_52 : f32 to vector<4x64xf32>
      %167 = arith.addf %165, %166 : vector<4x64xf32>
      %cst_53 = arith.constant 5.000000e-01 : f32
      %168 = vector.broadcast %cst_53 : f32 to vector<4x64xf32>
      %169 = arith.mulf %168, %167 : vector<4x64xf32>
      %170 = vector.extract_strided_slice %161 {offsets = [0, 64], sizes = [4, 64], strides = [1, 1]} : vector<4x256xf32> to vector<4x64xf32>
      %cst_54 = arith.constant 5.000000e-01 : f32
      %171 = vector.broadcast %cst_54 : f32 to vector<4x64xf32>
      %172 = arith.mulf %171, %170 : vector<4x64xf32>
      %173 = math.tanh %172 : vector<4x64xf32>
      %cst_55 = arith.constant 1.000000e+00 : f32
      %174 = vector.broadcast %cst_55 : f32 to vector<4x64xf32>
      %175 = arith.addf %173, %174 : vector<4x64xf32>
      %cst_56 = arith.constant 5.000000e-01 : f32
      %176 = vector.broadcast %cst_56 : f32 to vector<4x64xf32>
      %177 = arith.mulf %176, %175 : vector<4x64xf32>
      %178 = vector.extract_strided_slice %161 {offsets = [0, 128], sizes = [4, 64], strides = [1, 1]} : vector<4x256xf32> to vector<4x64xf32>
      %179 = math.tanh %178 : vector<4x64xf32>
      %180 = vector.extract_strided_slice %161 {offsets = [0, 192], sizes = [4, 64], strides = [1, 1]} : vector<4x256xf32> to vector<4x64xf32>
      %cst_57 = arith.constant 5.000000e-01 : f32
      %181 = vector.broadcast %cst_57 : f32 to vector<4x64xf32>
      %182 = arith.mulf %181, %180 : vector<4x64xf32>
      %183 = math.tanh %182 : vector<4x64xf32>
      %cst_58 = arith.constant 1.000000e+00 : f32
      %184 = vector.broadcast %cst_58 : f32 to vector<4x64xf32>
      %185 = arith.addf %183, %184 : vector<4x64xf32>
      %cst_59 = arith.constant 5.000000e-01 : f32
      %186 = vector.broadcast %cst_59 : f32 to vector<4x64xf32>
      %187 = arith.mulf %186, %185 : vector<4x64xf32>
      %188 = arith.mulf %177, %arg15 : vector<4x64xf32>
      %189 = arith.mulf %169, %179 : vector<4x64xf32>
      %190 = arith.addf %188, %189 : vector<4x64xf32>
      %191 = math.tanh %190 : vector<4x64xf32>
      %192 = arith.mulf %187, %191 : vector<4x64xf32>
      %c1_i32_60 = arith.constant 1 : i32
      %193 = arith.addi %arg7, %c1_i32_60 : i32
      %194 = vector.broadcast %193 : i32 to vector<4x1xi32>
      %195 = arith.cmpi eq, %5, %194 : vector<4x1xi32>
      %196 = vector.shape_cast %195 : vector<4x1xi1> to vector<4x1xi1>
      %197 = vector.broadcast %196 : vector<4x1xi1> to vector<4x64xi1>
      %198 = arith.select %197, %192, %arg16 : vector<4x64xi1>, vector<4x64xf32>
      scf.yield %63, %106, %149, %192, %61, %104, %147, %190, %198 : vector<4x64xf32>, vector<4x64xf32>, vector<4x64xf32>, vector<4x64xf32>, vector<4x64xf32>, vector<4x64xf32>, vector<4x64xf32>, vector<4x64xf32>, vector<4x64xf32>
    }
    %c8_i32_9 = arith.constant 8 : i32
    %9 = arith.mulf %8#8, %8#8 : vector<4x64xf32>
    %cst_10 = arith.constant dense<0.000000e+00> : vector<4xf32>
    %10 = vector.multi_reduction <add>, %9, %cst_10 [1] : vector<4x64xf32> to vector<4xf32>
    %11 = vector.shape_cast %10 : vector<4xf32> to vector<4x1xf32>
    %cst_11 = arith.constant 1.000000e-24 : f32
    %12 = vector.broadcast %cst_11 : f32 to vector<4x1xf32>
    %13 = arith.maximumf %11, %12 : vector<4x1xf32>
    %14 = math.rsqrt %13 : vector<4x1xf32>
    %15 = vector.broadcast %14 : vector<4x1xf32> to vector<4x64xf32>
    %16 = arith.mulf %8#8, %15 : vector<4x64xf32>
    %c0_12 = arith.constant 0 : index
    %c0_13 = arith.constant 0 : index
    %17 = vector.load %arg6[%c0_12, %c0_13] : memref<4x64xf32, #tpu.memory_space<vmem>>, vector<4x64xf32>
    tpu.vector_store %arg6[%c0_12, %c0_13], %16 {strides = array<i32>} : memref<4x64xf32, #tpu.memory_space<vmem>>, vector<4x64xf32>,
    return
  }
  func.func @transform_0(%arg0: i32) -> (i32, i32, i32) {
    %c0_i32 = arith.constant 0 : i32
    %c0_i32_0 = arith.constant 0 : i32
    %c0_i32_1 = arith.constant 0 : i32
    return %c0_i32, %arg0, %c0_i32_0 : i32, i32, i32
  }
  func.func @transform_1(%arg0: i32) -> (i32, i32) {
    %c0_i32 = arith.constant 0 : i32
    %c0_i32_0 = arith.constant 0 : i32
    return %arg0, %c0_i32 : i32, i32
  }
  func.func @transform_2(%arg0: i32) -> (i32, i32, i32) {
    %c0_i32 = arith.constant 0 : i32
    %c0_i32_0 = arith.constant 0 : i32
    %c0_i32_1 = arith.constant 0 : i32
    %c0_i32_2 = arith.constant 0 : i32
    return %c0_i32, %c0_i32_0, %c0_i32_1 : i32, i32, i32
  }
  func.func @transform_3(%arg0: i32) -> (i32, i32, i32) {
    %c0_i32 = arith.constant 0 : i32
    %c0_i32_0 = arith.constant 0 : i32
    %c0_i32_1 = arith.constant 0 : i32
    %c0_i32_2 = arith.constant 0 : i32
    return %c0_i32, %c0_i32_0, %c0_i32_1 : i32, i32, i32
  }
  func.func @transform_4(%arg0: i32) -> (i32, i32) {
    %c0_i32 = arith.constant 0 : i32
    %c0_i32_0 = arith.constant 0 : i32
    %c0_i32_1 = arith.constant 0 : i32
    return %c0_i32, %c0_i32_0 : i32, i32
  }
  func.func @transform_5(%arg0: i32) -> (i32, i32) {
    %c0_i32 = arith.constant 0 : i32
    %c0_i32_0 = arith.constant 0 : i32
    return %arg0, %c0_i32 : i32, i32
  }
}

</mosaic_0001>

<bundles_post_ra>
// kernel: tpu_custom_call.1
= control target key start
LH: loop header
LB: loop body
LE: loop exit
PB: predicated region body
PF: predicated region fallthrough
CT: control target
= control target key end

     0   :  { %10 = vsyncpa [#allocation3], 0  ;;  %s2130_s0 = inlined_call_operand.hbm [shape: f32[8,4,64], index: 0, kind: input, shape index: {}]   ;;  %s2131_s1 = inlined_call_operand.vmem [shape: s32[4,1], index: 1, kind: input, shape index: {}]   ;;  %s2132_s2 = inlined_call_operand.hbm [shape: bf16[4,64,256], index: 2, kind: input, shape index: {}]   ;;  %s2133_s3 = inlined_call_operand.hbm [shape: bf16[4,64,256], index: 3, kind: input, shape index: {}]   ;;  %s2134_s4 = inlined_call_operand.vmem [shape: f32[4,256], index: 4, kind: input, shape index: {}]   ;;  %s2135_s5 = inlined_call_operand.hbm [shape: f32[4,64], index: 5, kind: output, shape index: {}]  }
   0x1   :  { %11 = vsyncpa [#allocation6], 0 }
   0x2   :  { %12 = vsyncpa [#allocation4], 0  ;;  %s1620_s18 = smov [#allocation5]   ;;  %s1446_s22 = scalar_lea.hbm %s2132_s2, 4096 }
   0x3   :  { %s32_s19 = sshll.u32 %s1620_s18, 4  ;;  %p1447_p0 = scmp.ne.s32.totalorder %s2132_s2, %s1446_s22  ;;  %s33_s19 = int_to_ptr.vmem [resolvable:$true] %s32_s19 }
   0x4   :  { %p1450_p1 = scmp.lt.u32.totalorder %s1446_s22, %s2132_s2 }
   0x6   :  { %p1452_p2 = pnand %p1450_p1, %p1447_p0 }
   0x8   :  { %1455 = shalt.err (!%p1452_p2)
}
   0x9   :  { %s1456_s27 = scalar_lea.vmem %s33_s19, 4096  ;;  %p1461_p4 = scmp.lt.s32.totalorder %s33_s19, %s33_s19 }
   0xa   :  { %p1457_p3 = scmp.ne.s32.totalorder %s33_s19, %s1456_s27  ;;  %p1462_p5 = scmp.lt.s32.totalorder %s1456_s27, %s1456_s27 }
   0xc   :  { %p1463_p6 = por %p1462_p5, %p1461_p4 }
   0xe   :  { %p1464_p7 = pnand %p1463_p6, %p1457_p3 }
  0x10   :  { %1467 = shalt.err (!%p1464_p7)
}
  0x11   :  { %s1621_s28 = smov 128   ;;  %s1622_s29 = smov 8  }
  0x12   :  { %38 = dma.hbm_to_vmem [thread:$0]  %s2132_s2, 4096, %s33_s19, [#allocation6], %s1621_s28, %s1621_s28, %s1622_s29  }
  0x13   :  { %s1623_s7 = smov [#allocation2]   ;;  %s1468_s11 = scalar_lea.hbm %s2130_s0, 512 }
  0x14   :  { %s18_s8 = sshll.u32 %s1623_s7, 4  ;;  %p1469_p8 = scmp.ne.s32.totalorder %s2130_s0, %s1468_s11  ;;  %s19_s8 = int_to_ptr.vmem [resolvable:$true] %s18_s8 }
  0x15   :  { %p1472_p9 = scmp.lt.u32.totalorder %s1468_s11, %s2130_s0 }
  0x17   :  { %p1474_p10 = pnand %p1472_p9, %p1469_p8 }
  0x19   :  { %1477 = shalt.err (!%p1474_p10)
}
  0x1a   :  { %s1478_s16 = scalar_lea.vmem %s19_s8, 512  ;;  %p1483_p12 = scmp.lt.s32.totalorder %s19_s8, %s19_s8 }
  0x1b   :  { %p1479_p11 = scmp.ne.s32.totalorder %s19_s8, %s1478_s16  ;;  %p1484_p13 = scmp.lt.s32.totalorder %s1478_s16, %s1478_s16 }
  0x1d   :  { %p1485_p0 = por %p1484_p13, %p1483_p12 }
  0x1f   :  { %p1486_p1 = pnand %p1485_p0, %p1479_p11 }
  0x21   :  { %1489 = shalt.err (!%p1486_p1)
}
  0x22   :  { %s1624_s2 = smov 64   ;;  %s1625_s17 = smov 4  }
  0x23   :  { %24 = dma.hbm_to_vmem [thread:$0]  %s2130_s0, 512, %s19_s8, [#allocation3], %s1624_s2, %s1624_s2, %s1625_s17  }
  0x24   :  { %s1626_s20 = smov [#allocation7]   ;;  %s1490_s24 = scalar_lea.hbm %s2133_s3, 4096 }
  0x25   :  { %s44_s21 = sshll.u32 %s1626_s20, 4  ;;  %p1491_p2 = scmp.ne.s32.totalorder %s2133_s3, %s1490_s24  ;;  %s45_s21 = int_to_ptr.vmem [resolvable:$true] %s44_s21 }
  0x26   :  { %p1494_p3 = scmp.lt.u32.totalorder %s1490_s24, %s2133_s3 }
  0x28   :  { %p1496_p4 = pnand %p1494_p3, %p1491_p2 }
  0x2a   :  { %1499 = shalt.err (!%p1496_p4)
}
  0x2b   :  { %s1500_s6 = scalar_lea.vmem %s45_s21, 4096  ;;  %p1505_p6 = scmp.lt.s32.totalorder %s45_s21, %s45_s21 }
  0x2c   :  { %p1501_p5 = scmp.ne.s32.totalorder %s45_s21, %s1500_s6  ;;  %p1506_p7 = scmp.lt.s32.totalorder %s1500_s6, %s1500_s6 }
  0x2e   :  { %p1507_p8 = por %p1506_p7, %p1505_p6 }
  0x30   :  { %p1508_p9 = pnand %p1507_p8, %p1501_p5 }
  0x32   :  { %1511 = shalt.err (!%p1508_p9)
}
  0x33   :  { %50 = dma.hbm_to_vmem [thread:$0]  %s2133_s3, 4096, %s45_s21, [#allocation6], %s1621_s28, %s1621_s28, %s1622_s29  }
  0x34   :  { %1574 = dma.done.wait [#allocation3], 512  }
  0x35   :  { %1575 = vsyncadd [#allocation3], 4294966784 }
  0x36   :  { %1576 = dma.done.wait [#allocation6], 8192  }
  0x37   :  { %1577 = vsyncadd [#allocation6], 4294959104  ;;  %v1705_v0 = vld [vmem:[#allocation5] sm:$0xff]  ;;  %v1707_v1 = vld [vmem:[#allocation5 + $0x8] sm:$0xff] }
  0x38   :  { %2176 = vst [vmem:[#allocation12_spill] sm:$0xff] %v1705_v0  ;;  %2177 = vst [vmem:[#allocation13_spill] sm:$0xff] %v1707_v1  ;;  %v1709_v2 = vld [vmem:[#allocation5 + $0x10] sm:$0xff]  ;;  %v1711_v3 = vld [vmem:[#allocation5 + $0x18] sm:$0xff] }
  0x39   :  { %2178 = vst [vmem:[#allocation14_spill] sm:$0xff] %v1709_v2  ;;  %2179 = vst [vmem:[#allocation15_spill] sm:$0xff] %v1711_v3  ;;  %v1713_v4 = vld [vmem:[#allocation5 + $0x20] sm:$0xff]  ;;  %v1715_v5 = vld [vmem:[#allocation5 + $0x28] sm:$0xff] }
  0x3a   :  { %2180 = vst [vmem:[#allocation16_spill] sm:$0xff] %v1713_v4  ;;  %2181 = vst [vmem:[#allocation17_spill] sm:$0xff] %v1715_v5  ;;  %v1717_v6 = vld [vmem:[#allocation5 + $0x30] sm:$0xff]  ;;  %v1719_v7 = vld [vmem:[#allocation5 + $0x38] sm:$0xff] }
  0x3b   :  { %2182 = vst [vmem:[#allocation18_spill] sm:$0xff] %v1717_v6  ;;  %2183 = vst [vmem:[#allocation19_spill] sm:$0xff] %v1719_v7  ;;  %v1721_v8 = vld [vmem:[#allocation5 + $0x40] sm:$0xff]  ;;  %v1723_v9 = vld [vmem:[#allocation5 + $0x48] sm:$0xff] }
  0x3c   :  { %2184 = vst [vmem:[#allocation20_spill] sm:$0xff] %v1721_v8  ;;  %2185 = vst [vmem:[#allocation21_spill] sm:$0xff] %v1723_v9  ;;  %v1725_v10 = vld [vmem:[#allocation5 + $0x50] sm:$0xff]  ;;  %v1727_v11 = vld [vmem:[#allocation5 + $0x58] sm:$0xff] }
  0x3d   :  { %2186 = vst [vmem:[#allocation22_spill] sm:$0xff] %v1725_v10  ;;  %2187 = vst [vmem:[#allocation23_spill] sm:$0xff] %v1727_v11  ;;  %v1729_v12 = vld [vmem:[#allocation5 + $0x60] sm:$0xff]  ;;  %v1731_v13 = vld [vmem:[#allocation5 + $0x68] sm:$0xff] }
  0x3e   :  { %2188 = vst [vmem:[#allocation24_spill] sm:$0xff] %v1729_v12  ;;  %2189 = vst [vmem:[#allocation25_spill] sm:$0xff] %v1731_v13  ;;  %v1733_v14 = vld [vmem:[#allocation5 + $0x70] sm:$0xff]  ;;  %v1735_v15 = vld [vmem:[#allocation5 + $0x78] sm:$0xff] }
  0x3f   :  { %v1737_v16 = vld [vmem:[#allocation5 + $0x80] sm:$0xff]  ;;  %v1739_v17 = vld [vmem:[#allocation5 + $0x88] sm:$0xff]  ;;  %v1741_v18 = vld [vmem:[#allocation5 + $0x90] sm:$0xff] }
  0x40   :  { %v1743_v19 = vld [vmem:[#allocation5 + $0x98] sm:$0xff]  ;;  %v1745_v20 = vld [vmem:[#allocation5 + $0xa0] sm:$0xff]  ;;  %v1747_v21 = vld [vmem:[#allocation5 + $0xa8] sm:$0xff] }
  0x41   :  { %v1749_v22 = vld [vmem:[#allocation5 + $0xb0] sm:$0xff]  ;;  %v1751_v23 = vld [vmem:[#allocation5 + $0xb8] sm:$0xff]  ;;  %v1753_v24 = vld [vmem:[#allocation5 + $0xc0] sm:$0xff] }
  0x42   :  { %2190 = vst [vmem:[#allocation26_spill] sm:$0xff] %v1753_v24  ;;  %v1755_v25 = vld [vmem:[#allocation5 + $0xc8] sm:$0xff]  ;;  %v1757_v26 = vld [vmem:[#allocation5 + $0xd0] sm:$0xff]  ;;  %v1759_v27 = vld [vmem:[#allocation5 + $0xd8] sm:$0xff]  ;;  %v1851_v24 = vmov 0.0  }
  0x43   :  { %2191 = vst [vmem:[#allocation27_spill] sm:$0xff] %v1755_v25  ;;  %2192 = vst [vmem:[#allocation28_spill] sm:$0xff] %v1757_v26  ;;  %v1761_v28 = vld [vmem:[#allocation5 + $0xe0] sm:$0xff]  ;;  %v1763_v29 = vld [vmem:[#allocation5 + $0xe8] sm:$0xff]  ;;  %v1847_v26 = vmov 0.0   ;;  %v1853_v25 = vmov 0.0  }
  0x44   :  { %2193 = vst [vmem:[#allocation29_spill] sm:$0xff] %v1759_v27  ;;  %2194 = vst [vmem:[#allocation30_spill] sm:$0xff] %v1761_v28  ;;  %v1765_v30 = vld [vmem:[#allocation5 + $0xf0] sm:$0xff]  ;;  %v1767_v31 = vld [vmem:[#allocation5 + $0xf8] sm:$0xff]  ;;  %v1843_v28 = vmov 0.0   ;;  %v1849_v27 = vmov 0.0  }
  0x45   :  { %2195 = vst [vmem:[#allocation31_spill] sm:$0xff] %v1763_v29  ;;  %2196 = vst [vmem:[#allocation32_spill] sm:$0xff] %v1765_v30  ;;  %v1769_v32 = vld [vmem:[#allocation7] sm:$0xff]  ;;  %v1771_v33 = vld [vmem:[#allocation7 + $0x8] sm:$0xff]  ;;  %v1845_v29 = vmov 0.0  }
  0x46   :  { %2197 = vst [vmem:[#allocation33_spill] sm:$0xff] %v1767_v31  ;;  %2198 = vst [vmem:[#allocation34_spill] sm:$0xff] %v1769_v32  ;;  %v1773_v34 = vld [vmem:[#allocation7 + $0x10] sm:$0xff]  ;;  %v1775_v35 = vld [vmem:[#allocation7 + $0x18] sm:$0xff] }
  0x47   :  { %2199 = vst [vmem:[#allocation35_spill] sm:$0xff] %v1771_v33  ;;  %v1777_v36 = vld [vmem:[#allocation7 + $0x20] sm:$0xff]  ;;  %v1779_v37 = vld [vmem:[#allocation7 + $0x28] sm:$0xff]  ;;  %v1781_v38 = vld [vmem:[#allocation7 + $0x30] sm:$0xff] }
  0x48   :  { %v1783_v39 = vld [vmem:[#allocation7 + $0x38] sm:$0xff]  ;;  %v1785_v40 = vld [vmem:[#allocation7 + $0x40] sm:$0xff]  ;;  %v1787_v41 = vld [vmem:[#allocation7 + $0x48] sm:$0xff] }
  0x49   :  { %v1789_v42 = vld [vmem:[#allocation7 + $0x50] sm:$0xff]  ;;  %v1791_v43 = vld [vmem:[#allocation7 + $0x58] sm:$0xff]  ;;  %v1793_v44 = vld [vmem:[#allocation7 + $0x60] sm:$0xff] }
  0x4a   :  { %v1795_v45 = vld [vmem:[#allocation7 + $0x68] sm:$0xff]  ;;  %v1797_v46 = vld [vmem:[#allocation7 + $0x70] sm:$0xff]  ;;  %v1799_v47 = vld [vmem:[#allocation7 + $0x78] sm:$0xff] }
  0x4b   :  { %v1801_v48 = vld [vmem:[#allocation7 + $0x80] sm:$0xff]  ;;  %v1803_v49 = vld [vmem:[#allocation7 + $0x88] sm:$0xff]  ;;  %v1805_v50 = vld [vmem:[#allocation7 + $0x90] sm:$0xff] }
  0x4c   :  { %v1807_v51 = vld [vmem:[#allocation7 + $0x98] sm:$0xff]  ;;  %v1809_v52 = vld [vmem:[#allocation7 + $0xa0] sm:$0xff]  ;;  %v1811_v53 = vld [vmem:[#allocation7 + $0xa8] sm:$0xff] }
  0x4d   :  { %v1813_v54 = vld [vmem:[#allocation7 + $0xb0] sm:$0xff]  ;;  %v1815_v55 = vld [vmem:[#allocation7 + $0xb8] sm:$0xff]  ;;  %v1817_v56 = vld [vmem:[#allocation7 + $0xc0] sm:$0xff] }
  0x4e   :  { %v1819_v57 = vld [vmem:[#allocation7 + $0xc8] sm:$0xff]  ;;  %v1821_v58 = vld [vmem:[#allocation7 + $0xd0] sm:$0xff]  ;;  %v1823_v59 = vld [vmem:[#allocation7 + $0xd8] sm:$0xff] }
  0x4f   :  { %2200 = vst [vmem:[#allocation36_spill] sm:$0xff] %v1821_v58  ;;  %v1825_v60 = vld [vmem:[#allocation7 + $0xe0] sm:$0xff]  ;;  %v1827_v61 = vld [vmem:[#allocation7 + $0xe8] sm:$0xff]  ;;  %v1829_v62 = vld [vmem:[#allocation7 + $0xf0] sm:$0xff] }
  0x50   :  { %2201 = vst [vmem:[#allocation37_spill] sm:$0xff] %v1825_v60  ;;  %2202 = vst [vmem:[#allocation38_spill] sm:$0xff] %v1827_v61  ;;  %v1831_v63 = vld [vmem:[#allocation7 + $0xf8] sm:$0xff]  ;;  %v1836_v30 = vld [vmem:[%s2134_s4] sm:$0xff]  ;;  %v1859_v60 = vmov 0.0  }
  0x51   :  { %2203 = vst [vmem:[#allocation39_spill] sm:$0xff] %v1829_v62  ;;  %2204 = vst [vmem:[#allocation40_spill] sm:$0xff] %v1831_v63  ;;  %v1841_v31 = vld [vmem:[%s2131_s1] sm:$0xf]  ;;  %v1855_v62 = vmov 0.0   ;;  %v1857_v63 = vmov 0.0  }
  0x52   :  { %2205 = vst [vmem:[#allocation41_spill] sm:$0xff] %v1841_v31  ;;  %s1861_s1 = smov 0  }
  0x53 LB: > { %v2206_v13 = vld [vmem:[#allocation25_spill] sm:$0xff]  ;;  %v2207_v12 = vld [vmem:[#allocation24_spill] sm:$0xff]  ;;  %v2208_v11 = vld [vmem:[#allocation23_spill] sm:$0xff]  ;;  %2222 = vst [vmem:[#allocation42_spill] sm:$0xff] %v1582_v28  ;;  %v1257_v31 = vcombine.high %v1773_v34, %v1775_v35  ;;  %s1627_s4 = smov 64   ;;  %v2156_v61 = vmov 0.0   ;;  %v1259_v58 = vcombine.high %v1777_v36, %v1779_v37  ;;  %v1602_v25 = vphi %v1853_v25, %v1033_v25   ;;  %v1598_v24 = vphi %v1851_v24, %v1975_v24   ;;  %v1594_v27 = vphi %v1849_v27, %v2026_v27   ;;  %v1590_v26 = vphi %v1847_v26, %v841_v26   ;;  %v1586_v29 = vphi %v1845_v29, %v1031_v29   ;;  %v1582_v28 = vphi %v1843_v28, %v2249_v28   ;;  %s1618_s1 = sphi %s1861_s1, %s2079_s1   ;;  %v1614_v60 = vphi %v1859_v60, %v1978_v60   ;;  %v1610_v63 = vphi %v1857_v63, %v2029_v63   ;;  %v1606_v62 = vphi %v1855_v62, %v843_v62  }
  0x54   : > { %v2209_v10 = vld [vmem:[#allocation22_spill] sm:$0xff]  ;;  %v2210_v9 = vld [vmem:[#allocation21_spill] sm:$0xff]  ;;  %v2211_v8 = vld [vmem:[#allocation20_spill] sm:$0xff]  ;;  %2223 = vst [vmem:[#allocation43_spill] sm:$0xff] %v1586_v29  ;;  %275 = vrot.lane.b32.xlu0 %v1614_v60, %s1627_s4  ;;  %344 = vmatprep.mubr.f32.mxu0 %v2156_v61  ;;  %vm277_vm0 = vcmask 523264   ;;  %s1110_s9 = sshll.u32 %s1618_s1, 2 }
  0x55   : > { %v2212_v33 = vld [vmem:[#allocation35_spill] sm:$0xff]  ;;  %v2214_v6 = vld [vmem:[#allocation18_spill] sm:$0xff]  ;;  %v2215_v5 = vld [vmem:[#allocation17_spill] sm:$0xff]  ;;  %2224 = vst [vmem:[#allocation44_spill] sm:$0xff] %v1590_v26  ;;  %v1258_v26 = vcombine.low %v1773_v34, %v1775_v35  ;;  %533 = vmatprep.mubr.f32.mxu1 %v2156_v61  ;;  %s272_s10 = scalar_lea.vmem [#allocation2], %s1110_s9  ;;  %465 = vrot.lane.b32.xlu1 %v1610_v63, %s1627_s4  ;;  %v1280_v63 = vcombine.low %v2211_v8, %v2210_v9  ;;  %s2079_s1 = sadd.s32 1, %s1618_s1  }
  0x56   : > { %v2213_v7 = vld [vmem:[#allocation19_spill] sm:$0xff]  ;;  %v2216_v4 = vld [vmem:[#allocation16_spill] sm:$0xff]  ;;  %v2218_v2 = vld [vmem:[#allocation14_spill] sm:$0xff]  ;;  %p258_p10 = scmp.ge.s32.totalorder %s2079_s1, 8  }
  0x57   : > { %v2217_v3 = vld [vmem:[#allocation15_spill] sm:$0xff]  ;;  %v2219_v1 = vld [vmem:[#allocation13_spill] sm:$0xff]  ;;  %v2220_v0 = vld [vmem:[#allocation12_spill] sm:$0xff]  ;;  %vm1048_vm3 = vcmask (%p258_p10), 519168   ;;  %s1630_s11 = smov (%p258_p10), [#allocation8]  }
  0x58   : > { %v2221_v32 = vld [vmem:[#allocation34_spill] sm:$0xff]  ;;  %s1066_s12 = sshll.u32 (%p258_p10), %s1630_s11, 4  ;;  %s1067_s12 = int_to_ptr.vmem [resolvable:$true] %s1066_s12 }
  0x59   : > { %v1255_v28 = vcombine.high %v2221_v32, %v2212_v33  ;;  %v1256_v29 = vcombine.low %v2221_v32, %v2212_v33  ;;  %v1260_v32 = vcombine.low %v1777_v36, %v1779_v37  ;;  %s1512_s13 = scalar_lea.vmem (%p258_p10), %s1067_s12, 64  ;;  %p1517_p12 = scmp.lt.s32.totalorder (%p258_p10), %s1067_s12, %s1067_s12 }
  0x5a   :  { %p1513_p11 = scmp.ne.s32.totalorder (%p258_p10), %s1067_s12, %s1512_s13  ;;  %p1518_p13 = scmp.lt.s32.totalorder (%p258_p10), %s1512_s13, %s1512_s13 }
  0x5b   : > { %1120 = vmatprep.subr.bf16.mxu0 %v1255_v28  ;;  %v1261_v28 = vcombine.high %v1781_v38, %v1783_v39 }
  0x5c   : > { %1122 = vmatpush1.bf16.msra.mxu0 %v1256_v29  ;;  %v1262_v29 = vcombine.low %v1781_v38, %v1783_v39  ;;  %p1519_p0 = por (%p258_p10), %p1518_p13, %p1517_p12 }
  0x5d   : > { %1124 = vmatprep.subr.bf16.mxu0 %v1257_v31  ;;  %v1263_v31 = vcombine.high %v2220_v0, %v2219_v1 }
  0x5e   :  { %p1520_p1 = pnand (%p258_p10), %p1519_p0, %p1513_p11 }
  0x60   : > { %1126 = vmatpush1.bf16.msra.mxu0 %v1258_v26  ;;  %v1264_v26 = vcombine.low %v2220_v0, %v2219_v1 }
  0x61   : > { %1128 = vmatprep.subr.bf16.mxu0 %v1259_v58  ;;  %v1265_v58 = vcombine.high %v2218_v2, %v2217_v3 }
  0x64   : > { %1130 = vmatpush1.bf16.msra.mxu0 %v1260_v32  ;;  %v1266_v32 = vcombine.low %v2218_v2, %v2217_v3 }
  0x65   : > { %1132 = vmatprep.subr.bf16.mxu0 %v1261_v28  ;;  %v1267_v28 = vcombine.high %v2216_v4, %v2215_v5 }
  0x68   : > { %1134 = vmatpush1.bf16.msra.mxu0 %v1262_v29  ;;  %v1268_v29 = vcombine.low %v2216_v4, %v2215_v5 }
  0x69   : > { %1136 = vmatprep.subr.bf16.mxu0 %v1263_v31  ;;  %v1269_v31 = vcombine.high %v2214_v6, %v2213_v7 }
  0xc6   : > { %v276_v60 = vpop.permute.xlu0 %275 }
  0xc7   : > { %1111 = vmatmul.mubr.msk.f32.vlgmr.msra.gmra.mrb[0].mxu0 %vm277_vm0, %v276_v60  ;;  %v426_v60 = vlaneseq }
  0xc8   : > { %1138 = vmatpush1.bf16.msra.mxu0 %v1264_v26  ;;  %418 = vmatprep.mubr.f32.mxu0 %v2156_v61  ;;  %v1270_v26 = vcombine.low %v2214_v6, %v2213_v7 }
  0xc9   : > { %1140 = vmatprep.subr.bf16.mxu0 %v1265_v58  ;;  %v273_v58 = vld [vmem:[%s272_s10] sm:$0xf] }
  0xcc   : > { %1142 = vmatpush1.bf16.msra.mxu0 %v1266_v32  ;;  %v1931_v32 = vshrl.u32 %v426_v60, 7 }
  0xcd   : > { %1144 = vmatprep.subr.bf16.mxu0 %v1267_v28 }
  0xce   : > { %v428_v28 = vsub.s32 0, %v1931_v32 }
  0xd0   : > { %1146 = vmatpush1.bf16.msra.mxu0 %v1268_v29  ;;  %v429_v0 = vrot.slane %v1836_v30, %v428_v28  ;;  %v432_v29 = vsub.s32 4, %v1931_v32 }
  0xd1   : > { %1148 = vmatprep.subr.bf16.mxu0 %v1269_v31 }
  0xd2   : > { %v439_v1 = vrot.slane %v429_v0, %v428_v28  ;;  %v433_v2 = vrot.slane %v1836_v30, %v432_v29  ;;  %v1271_v0 = vcombine.high %v1785_v40, %v1787_v41  ;;  %v466_v29 = vpop.permute.xlu1 %465 }
  0xd4   : > { %1150 = vmatpush1.bf16.msra.mxu0 %v1270_v26  ;;  %v443_v4 = vrot.slane %v433_v2, %v428_v28  ;;  %v1273_v2 = vcombine.high %v1789_v42, %v1791_v43  ;;  %1152 = vmatprep.subr.bf16.mxu1 %v1271_v0  ;;  %v1281_v28 = vcombine.high %v2209_v10, %v2208_v11 }
  0xd7   : > { %1112 = vmatmul.mubr.msk.f32.vlgmr.msra.gmra.mrb[0].mxu0 %vm277_vm0, %v273_v58 }
  0xd8   : > { %723 = vmatprep.mubr.f32.mxu0 %v2156_v61 }
 0x1aa   : > { %v420_v31 = vpop.f32.mrb[0].mxu0 }
 0x1ab   : > { %v444_v26 = vadd.f32 %v439_v1, %v420_v31  ;;  %v422_v3 = vpop.f32.mrb[1].mxu0  ;;  %v1272_v1 = vcombine.low %v1785_v40, %v1787_v41  ;;  %v1282_v31 = vcombine.low %v2209_v10, %v2208_v11  ;;  %v2237_v10 = vld [vmem:[#allocation28_spill] sm:$0xff] }
 0x1ac   : > { %v445_v58 = vadd.f32 %v443_v4, %v422_v3  ;;  %v1274_v3 = vcombine.low %v1789_v42, %v1791_v43  ;;  %v1275_v4 = vcombine.high %v1793_v44, %v1795_v45 }
 0x1ad   : > { %v446_v5 = vmul.f32 0.5, %v444_v26  ;;  %1154 = vmatpush1.bf16.msra.mxu1 %v1272_v1  ;;  %v2225_v26 = vmov 0.0   ;;  %v1284_v1 = vcombine.low %v2207_v12, %v2206_v13 }
 0x1ae   : > { %1156 = vmatprep.subr.bf16.mxu1 %v1273_v2  ;;  %v451_v0 = vmul.f32 0.5, %v445_v58  ;;  %v1285_v2 = vcombine.high %v1733_v14, %v1735_v15 }
 0x1af   : > { %1412 = vtanh.f32 %v446_v5  ;;  %v1276_v5 = vcombine.low %v1793_v44, %v1795_v45 }
 0x1b0   : > { %1414 = vtanh.f32 %v445_v58 }
 0x1b1   : > { %1158 = vmatpush1.bf16.msra.mxu1 %v1274_v3  ;;  %1416 = vtanh.f32 %v451_v0  ;;  %v1286_v3 = vcombine.low %v1733_v14, %v1735_v15 }
 0x1b2   : > { %1160 = vmatprep.subr.bf16.mxu1 %v1275_v4 }
 0x1b5   : > { %1162 = vmatpush1.bf16.msra.mxu1 %v1276_v5 }
 0x1b9   : > { %v1413_v60 = vpop.eup %1412 }
 0x1ba   : > { %v448_v61 = vadd.f32 1.0, %v1413_v60  ;;  %v1415_v7 = vpop.eup %1414  ;;  %v1283_v60 = vcombine.high %v2207_v12, %v2206_v13  ;;  %v2244_v12 = vld [vmem:[#allocation32_spill] sm:$0xff] }
 0x1bb   : > { %v1417_v58 = vpop.eup %1416 }
 0x1bc   : > { %v449_v6 = vmul.f32 0.5, %v448_v61  ;;  %v1279_v61 = vcombine.high %v2211_v8, %v2210_v9 }
 0x1be   : > { %v456_v33 = vmul.f32 %v1415_v7, %v449_v6  ;;  %v1277_v7 = vcombine.high %v1797_v46, %v1799_v47  ;;  %v455_v4 = vmul.f32 %v1598_v24, %v449_v6  ;;  %v618_v6 = vsub.s32 1, %v1931_v32 }
 0x1c0   : > { %458 = vrot.lane.b32.xlu0 %v456_v33, %s1627_s4  ;;  %v1278_v33 = vcombine.low %v1797_v46, %v1799_v47  ;;  %1164 = vmatprep.subr.bf16.mxu1 %v1277_v7  ;;  %v453_v7 = vadd.f32 1.0, %v1417_v58 }
 0x1c2   : > { %1166 = vmatpush1.bf16.msra.mxu1 %v1278_v33  ;;  %v454_v33 = vmul.f32 0.5, %v453_v7 }
 0x1c3   : > { %1168 = vmatprep.subr.bf16.mxu1 %v1279_v61 }
 0x1c5   : > { %1113 = vmatmul.mubr.msk.f32.vlgmr.msra.gmra.mrb[0].mxu1 %vm277_vm0, %v466_v29  ;;  %v622_v29 = vsub.s32 5, %v1931_v32 }
 0x1c6   : > { %1170 = vmatpush1.bf16.msra.mxu1 %v1280_v63  ;;  %609 = vmatprep.mubr.f32.mxu1 %v2225_v26 }
 0x1c7   : > { %1172 = vmatprep.subr.bf16.mxu1 %v1281_v28  ;;  %v619_v28 = vrot.slane %v1836_v30, %v618_v6  ;;  %v623_v0 = vrot.slane %v1836_v30, %v622_v29  ;;  %v1289_v29 = vcombine.high %v1805_v50, %v1807_v51 }
 0x1ca   : > { %1174 = vmatpush1.bf16.msra.mxu1 %v1282_v31  ;;  %v629_v31 = vrot.slane %v619_v28, %v618_v6  ;;  %v1287_v28 = vcombine.high %v1801_v48, %v1803_v49 }
 0x1cb   : > { %1176 = vmatprep.subr.bf16.mxu1 %v1283_v60 }
 0x1cc   : > { %1184 = vmatprep.subr.bf16.mxu0 %v1287_v28  ;;  %v1300_v28 = vcombine.low %v1745_v20, %v1747_v21 }
 0x1ce   : > { %1178 = vmatpush1.bf16.msra.mxu1 %v1284_v1 }
 0x1cf   : > { %1180 = vmatprep.subr.bf16.mxu1 %v1285_v2 }
 0x1d2   : > { %1182 = vmatpush1.bf16.msra.mxu1 %v1286_v3 }
 0x232   : > { %v459_v5 = vpop.permute.xlu0 %458 }
 0x233   : > { %v1975_v24 = vadd.f32 %v459_v5, %v455_v4   ;;  %v633_v4 = vrot.slane %v623_v0, %v618_v6  ;;  %v1288_v6 = vcombine.low %v1801_v48, %v1803_v49  ;;  %v1293_v0 = vcombine.high %v1813_v54, %v1815_v55 }
 0x235   : > { %1418 = vtanh.f32 %v1975_v24  ;;  %1186 = vmatpush1.bf16.msra.mxu0 %v1288_v6  ;;  %v1301_v6 = vcombine.high %v1749_v22, %v1751_v23 }
 0x236   : > { %1188 = vmatprep.subr.bf16.mxu0 %v1289_v29  ;;  %v1302_v29 = vcombine.low %v1749_v22, %v1751_v23 }
 0x23f   : > { %v1419_v61 = vpop.eup %1418 }
 0x240   : > { %v1978_v60 = vmul.f32 %v1419_v61, %v454_v33  }
 0x242   : > { %541 = vrot.lane.b32.xlu1 %v1978_v60, %s1627_s4 }
 0x246   : > { %655 = vrot.lane.b32.xlu1 %v1606_v62, %s1627_s4  ;;  %v1290_v62 = vcombine.low %v1805_v50, %v1807_v51 }
 0x248   : > { %1190 = vmatpush1.bf16.msra.mxu0 %v1290_v62 }
 0x2b4   : > { %v542_v63 = vpop.permute.xlu1 %541 }
 0x2b5   : > { %1114 = vmatmul.mubr.msk.f32.vlgmr.msra.gmra.mrb[0].mxu1 %vm277_vm0, %v542_v63 }
 0x2b6   : > { %913 = vmatprep.mubr.f32.mxu1 %v2225_v26 }
 0x388   : > { %v611_v1 = vpop.f32.mrb[0].mxu1 }
 0x389   : > { %v634_v2 = vadd.f32 %v629_v31, %v611_v1  ;;  %v613_v3 = vpop.f32.mrb[1].mxu1  ;;  %v1291_v31 = vcombine.high %v1809_v52, %v1811_v53  ;;  %v1294_v1 = vcombine.low %v1813_v54, %v1815_v55 }
 0x38a   : > { %v635_v58 = vadd.f32 %v633_v4, %v613_v3  ;;  %v1296_v3 = vcombine.low %v1737_v16, %v1739_v17  ;;  %v1297_v4 = vcombine.high %v1741_v18, %v1743_v19 }
 0x38b   : > { %v636_v5 = vmul.f32 0.5, %v634_v2  ;;  %1192 = vmatprep.subr.bf16.mxu0 %v1291_v31  ;;  %v1295_v2 = vcombine.high %v1737_v16, %v1739_v17 }
 0x38d   : > { %1420 = vtanh.f32 %v636_v5  ;;  %v656_v5 = vpop.permute.xlu1 %655 }
 0x38e   : > { %1422 = vtanh.f32 %v635_v58 }
 0x397   : > { %v1421_v7 = vpop.eup %1420 }
 0x398   : > { %v638_v33 = vadd.f32 1.0, %v1421_v7  ;;  %v1423_v63 = vpop.eup %1422  ;;  %v1298_v7 = vcombine.low %v1741_v18, %v1743_v19 }
 0x39a   : > { %v639_v61 = vmul.f32 0.5, %v638_v33  ;;  %v1299_v33 = vcombine.high %v1745_v20, %v1747_v21 }
 0x39c   : > { %v646_v8 = vmul.f32 %v1423_v63, %v639_v61  ;;  %v641_v63 = vmul.f32 0.5, %v635_v58  ;;  %v645_v62 = vmul.f32 %v1594_v27, %v639_v61  ;;  %v808_v61 = vsub.s32 2, %v1931_v32 }
 0x39e   : > { %648 = vrot.lane.b32.xlu0 %v646_v8, %s1627_s4  ;;  %v1292_v8 = vcombine.low %v1809_v52, %v1811_v53  ;;  %1424 = vtanh.f32 %v641_v63 }
 0x3a0   : > { %1194 = vmatpush1.bf16.msra.mxu0 %v1292_v8 }
 0x3a1   : > { %1196 = vmatprep.subr.bf16.mxu0 %v1293_v0 }
 0x3a4   : > { %1198 = vmatpush1.bf16.msra.mxu0 %v1294_v1 }
 0x3a5   : > { %1200 = vmatprep.subr.bf16.mxu0 %v1295_v2 }
 0x3a7   : > { %1115 = vmatmul.mubr.msk.f32.vlgmr.msra.gmra.mrb[2].mxu0 %vm277_vm0, %v656_v5 }
 0x3a8   : > { %1202 = vmatpush1.bf16.msra.mxu0 %v1296_v3  ;;  %799 = vmatprep.mubr.f32.mxu0 %v2225_v26  ;;  %v1425_v58 = vpop.eup %1424  ;;  %v809_v3 = vrot.slane %v1836_v30, %v808_v61 }
 0x3a9   : > { %1204 = vmatprep.subr.bf16.mxu0 %v1297_v4  ;;  %v643_v8 = vadd.f32 1.0, %v1425_v58  ;;  %v812_v4 = vsub.s32 6, %v1931_v32 }
 0x3aa   : > { %v819_v5 = vrot.slane %v809_v3, %v808_v61  ;;  %v1303_v3 = vcombine.high %v1817_v56, %v1819_v57 }
 0x3ab   : > { %v644_v0 = vmul.f32 0.5, %v643_v8 }
 0x3ac   : > { %1206 = vmatpush1.bf16.msra.mxu0 %v1298_v7  ;;  %v813_v7 = vrot.slane %v1836_v30, %v812_v4  ;;  %v2226_v4 = vld [vmem:[#allocation36_spill] sm:$0xff]  ;;  %1216 = vmatprep.subr.bf16.mxu1 %v1303_v3  ;;  %v2233_v3 = vld [vmem:[#allocation27_spill] sm:$0xff] }
 0x3ad   : > { %1208 = vmatprep.subr.bf16.mxu0 %v1299_v33 }
 0x3b0   : > { %1210 = vmatpush1.bf16.msra.mxu0 %v1300_v28 }
 0x3b1   : > { %1212 = vmatprep.subr.bf16.mxu0 %v1301_v6 }
 0x3b4   : > { %1214 = vmatpush1.bf16.msra.mxu0 %v1302_v29  ;;  %v823_v29 = vrot.slane %v813_v7, %v808_v61  ;;  %v1304_v61 = vcombine.low %v1817_v56, %v1819_v57  ;;  %v2227_v7 = vld [vmem:[#allocation38_spill] sm:$0xff] }
 0x3b6   : > { %1218 = vmatpush1.bf16.msra.mxu1 %v1304_v61  ;;  %v2234_v61 = vld [vmem:[#allocation26_spill] sm:$0xff] }
 0x410   : > { %v649_v31 = vpop.permute.xlu0 %648 }
 0x411   : > { %v2026_v27 = vadd.f32 %v649_v31, %v645_v62  }
 0x413   : > { %1426 = vtanh.f32 %v2026_v27 }
 0x41d   : > { %v1427_v1 = vpop.eup %1426 }
 0x41e   : > { %v2029_v63 = vmul.f32 %v1427_v1, %v644_v0  }
 0x420   : > { %731 = vrot.lane.b32.xlu0 %v2029_v63, %s1627_s4 }
 0x424   : > { %845 = vrot.lane.b32.xlu0 %v1602_v25, %s1627_s4  ;;  %v1306_v25 = vcombine.low %v2226_v4, %v1823_v59 }
 0x492   : > { %v732_v2 = vpop.permute.xlu0 %731 }
 0x493   : > { %1116 = vmatmul.mubr.msk.f32.vlgmr.msra.gmra.mrb[2].mxu0 %vm277_vm0, %v732_v2 }
 0x566   : > { %v801_v33 = vpop.f32.mrb[2].mxu0 }
 0x567   : > { %v824_v28 = vadd.f32 %v819_v5, %v801_v33  ;;  %v803_v6 = vpop.f32.mrb[3].mxu0  ;;  %v1305_v5 = vcombine.high %v2226_v4, %v1823_v59  ;;  %v2228_v33 = vld [vmem:[#allocation37_spill] sm:$0xff]  ;;  %v1311_v4 = vcombine.high %v2234_v61, %v2233_v3 }
 0x568   : > { %v825_v31 = vadd.f32 %v823_v29, %v803_v6  ;;  %v1308_v6 = vcombine.low %v2228_v33, %v2227_v7  ;;  %v2229_v29 = vld [vmem:[#allocation40_spill] sm:$0xff] }
 0x569   : > { %v826_v62 = vmul.f32 0.5, %v824_v28  ;;  %1220 = vmatprep.subr.bf16.mxu1 %v1305_v5  ;;  %v1307_v28 = vcombine.high %v2228_v33, %v2227_v7  ;;  %v1312_v5 = vcombine.low %v2234_v61, %v2233_v3 }
 0x56a   : > { %1222 = vmatpush1.bf16.msra.mxu1 %v1306_v25  ;;  %v2235_v25 = vld [vmem:[#allocation29_spill] sm:$0xff] }
 0x56b   : > { %1428 = vtanh.f32 %v826_v62  ;;  %1224 = vmatprep.subr.bf16.mxu1 %v1307_v28  ;;  %v2231_v62 = vld [vmem:[#allocation39_spill] sm:$0xff]  ;;  %v2236_v9 = vmov %v2235_v25  ;;  %v1313_v7 = vcombine.high %v2237_v10, %v2235_v25  ;;  %v846_v28 = vpop.permute.xlu0 %845  ;;  %v2242_v25 = vld [vmem:[#allocation33_spill] sm:$0xff] }
 0x56c   : > { %1430 = vtanh.f32 %v825_v31  ;;  %v2243_v11 = vmov %v2242_v25  ;;  %v1317_v13 = vcombine.high %v2244_v12, %v2242_v25  ;;  %v998_v25 = vsub.s32 3, %v1931_v32 }
 0x56e   : > { %1226 = vmatpush1.bf16.msra.mxu1 %v1308_v6  ;;  %v1314_v6 = vcombine.low %v2237_v10, %v2236_v9 }
 0x575   : > { %v1429_v58 = vpop.eup %1428 }
 0x576   : > { %v828_v8 = vadd.f32 1.0, %v1429_v58  ;;  %v1431_v1 = vpop.eup %1430  ;;  %v2230_v58 = vmov %v2229_v29 }
 0x578   : > { %v829_v0 = vmul.f32 0.5, %v828_v8  ;;  %v2232_v8 = vmov %v2231_v62 }
 0x57a   : > { %v836_v2 = vmul.f32 %v1431_v1, %v829_v0  ;;  %v1309_v1 = vcombine.high %v2231_v62, %v2229_v29  ;;  %v2238_v29 = vld [vmem:[#allocation31_spill] sm:$0xff]  ;;  %v2240_v62 = vld [vmem:[#allocation30_spill] sm:$0xff] }
 0x57c   : > { %838 = vrot.lane.b32.xlu1 %v836_v2, %s1627_s4  ;;  %v1310_v2 = vcombine.low %v2232_v8, %v2230_v58  ;;  %1228 = vmatprep.subr.bf16.mxu1 %v1309_v1  ;;  %v2239_v1 = vmov %v2238_v29  ;;  %v2241_v8 = vmov %v2240_v62 }
 0x57d   : > { %v1316_v3 = vcombine.low %v2241_v8, %v2239_v1 }
 0x57e   : > { %1230 = vmatpush1.bf16.msra.mxu1 %v1310_v2  ;;  %v1315_v2 = vcombine.high %v2240_v62, %v2238_v29 }
 0x57f   : > { %1232 = vmatprep.subr.bf16.mxu1 %v1311_v4  ;;  %v831_v4 = vmul.f32 0.5, %v825_v31 }
 0x581   : > { %1117 = vmatmul.mubr.msk.f32.vlgmr.msra.gmra.mrb[2].mxu1 %vm277_vm0, %v846_v28  ;;  %1432 = vtanh.f32 %v831_v4 }
 0x582   : > { %1234 = vmatpush1.bf16.msra.mxu1 %v1312_v5  ;;  %989 = vmatprep.mubr.f32.mxu1 %v2225_v26  ;;  %v1318_v5 = vcombine.low %v2244_v12, %v2243_v11  ;;  %v2245_v26 = vld [vmem:[#allocation44_spill] sm:$0xff] }
 0x583   : > { %1236 = vmatprep.subr.bf16.mxu1 %v1313_v7  ;;  %v835_v7 = vmul.f32 %v2245_v26, %v829_v0  ;;  %v1035_v0 = vstv %s2079_s1 }
 0x586   : > { %1238 = vmatpush1.bf16.msra.mxu1 %v1314_v6 }
 0x587   : > { %1240 = vmatprep.subr.bf16.mxu1 %v1315_v2 }
 0x58a   : > { %1242 = vmatpush1.bf16.msra.mxu1 %v1316_v3  ;;  %v2246_v3 = vld [vmem:[#allocation41_spill] sm:$0xff] }
 0x58b   : > { %1244 = vmatprep.subr.bf16.mxu1 %v1317_v13  ;;  %v1433_v31 = vpop.eup %1432  ;;  %v1629_v13 = vmov 0   ;;  %vm1036_vm1 = vcmp.eq.s32.totalorder %v2246_v3, %v1035_v0 }
 0x58c   : > { %v833_v6 = vadd.f32 1.0, %v1433_v31  ;;  %1410 = vset.pattern.permute.xlu1 %v1629_v13  ;;  %1411 = vset.pattern.permute.xlu0 %v1629_v13  ;;  %v1037_v4 = vsel %vm1036_vm1, 1, %v1629_v13 }
 0x58e   : > { %1246 = vmatpush1.bf16.msra.mxu1 %v1318_v5  ;;  %v834_v29 = vmul.f32 0.5, %v833_v6  ;;  %v999_v5 = vrot.slane %v1836_v30, %v998_v25 }
 0x5ee   : > { %v839_v28 = vpop.permute.xlu1 %838 }
 0x5ef   : > { %v841_v26 = vadd.f32 %v839_v28, %v835_v7   ;;  %v1002_v7 = vsub.s32 7, %v1931_v32  ;;  %v1009_v28 = vrot.slane %v999_v5, %v998_v25  ;;  %v2247_v32 = vld [vmem:[#allocation43_spill] sm:$0xff] }
 0x5f1   : > { %1434 = vtanh.f32 %v841_v26  ;;  %v1003_v31 = vrot.slane %v1836_v30, %v1002_v7 }
 0x5f3   : > { %v1013_v1 = vrot.slane %v1003_v31, %v998_v25 }
 0x5fb   : > { %v1435_v62 = vpop.eup %1434 }
 0x5fc   : > { %v843_v62 = vmul.f32 %v1435_v62, %v834_v29  }
 0x5fe   : > { %921 = vrot.lane.b32.xlu1 %v843_v62, %s1627_s4 }
 0x602   : > { %1039 = vperm.xlu1 %1410, %v1037_v4  }
 0x670   : > { %v922_v2 = vpop.permute.xlu1 %921 }
 0x671   : > { %1118 = vmatmul.mubr.msk.f32.vlgmr.msra.gmra.mrb[2].mxu1 %vm277_vm0, %v922_v2 }
 0x681   : > { %v1040_v31 = vpop.permute.xlu1 %1039 }
 0x682   : > { %vm1041_vm2 = vcmp.eq.s32.totalorder %v1040_v31, 1 }
 0x744   : > { %v991_v6 = vpop.f32.mrb[2].mxu1 }
 0x745   : > { %v1014_v29 = vadd.f32 %v1009_v28, %v991_v6  ;;  %v993_v2 = vpop.f32.mrb[3].mxu1  ;;  %v2248_v6 = vld [vmem:[#allocation42_spill] sm:$0xff] }
 0x746   : > { %v1015_v9 = vadd.f32 %v1013_v1, %v993_v2 }
 0x747   : > { %v1016_v8 = vmul.f32 0.5, %v1014_v29 }
 0x748   : > { %v1021_v11 = vmul.f32 0.5, %v1015_v9 }
 0x749   : > { %1436 = vtanh.f32 %v1016_v8 }
 0x74a   : > { %1438 = vtanh.f32 %v1015_v9 }
 0x74b   : > { %1440 = vtanh.f32 %v1021_v11 }
 0x753   : > { %v1437_v0 = vpop.eup %1436 }
 0x754   : > { %v1018_v13 = vadd.f32 1.0, %v1437_v0  ;;  %v1439_v4 = vpop.eup %1438 }
 0x755   : > { %v1441_v28 = vpop.eup %1440 }
 0x756   : > { %v1019_v3 = vmul.f32 0.5, %v1018_v13  ;;  %v1023_v25 = vadd.f32 1.0, %v1441_v28 }
 0x758   : > { %v1026_v10 = vmul.f32 %v1439_v4, %v1019_v3  ;;  %v1025_v5 = vmul.f32 %v2247_v32, %v1019_v3  ;;  %v1024_v8 = vmul.f32 0.5, %v1023_v25 }
 0x75a   : > { %1028 = vrot.lane.b32.xlu0 %v1026_v10, %s1627_s4 }
 0x7cc   : > { %v1029_v7 = vpop.permute.xlu0 %1028 }
 0x7cd   : > { %v1031_v29 = vadd.f32 %v1029_v7, %v1025_v5  }
 0x7cf   : > { %1442 = vtanh.f32 %v1031_v29 }
 0x7d7   :  { %260 = sbr.rel (!%p258_p10) target bundleno = 83 (0x53), region = 60 }
 0x7d9   : > { %v1443_v1 = vpop.eup %1442 }
 0x7da   : > { %v1033_v25 = vmul.f32 %v1443_v1, %v1024_v8  }
 0x7dc   : > { %v1042_v2 = vsel %vm1041_vm2, %v1033_v25, %v2248_v6  }
 0x7dd   : > { %v2249_v28 = vmov %v1042_v2  ;;  %v1043_v9 = vmul.f32 (%p258_p10), %v1042_v2, %v1042_v2 }
 0x7df   :  { %1045 = vrot.lane.b32.xlu0 %v1043_v9, %s1624_s2 }
 0x851   :  { %v1046_v10 = vpop.permute.xlu0 %1045 }
 0x852   :  { %v1049_v11 = vsel %vm1048_vm3, %v1046_v10, 0.0 }
 0x853   :  { %1050 = vadd.xlane.f32.xlu0 %v1049_v11 }
 0x8e0   :  { %v1051_v0 = vpop.xlane.xlu0 %1050 }
 0x8e1   :  { %v1052_v13 = vmax.f32 %v1051_v0, 1e-24 }
 0x8e3   :  { %1444 = vrsqrt.f32 %v1052_v13 }
 0x8ed   :  { %v1445_v3 = vpop.eup %1444 }
 0x8ee   :  { %v1054_v4 = vmul.f32 %v1445_v3, %v1042_v2 }
 0x8f0   :  { %1056 = vrot.lane.b32.xlu1 %v1054_v4, %s1624_s2 }
 0x962   :  { %v1057_v60 = vpop.permute.xlu1 %1056 }
 0x963   :  { %1059 = vst.msk [vmem:[#allocation8] sm:$0xf] %vm1048_vm3, %v1057_v60 }
 0x964   :  { %1523 = shalt.err (!%p1520_p1)
}
 0x965   :  { %s1524_s16 = scalar_lea.hbm %s2135_s5, 64 }
 0x966   :  { %p1525_p2 = scmp.ne.s32.totalorder %s2135_s5, %s1524_s16  ;;  %p1528_p3 = scmp.lt.u32.totalorder %s1524_s16, %s2135_s5 }
 0x968   :  { %p1530_p4 = pnand %p1528_p3, %p1525_p2 }
 0x96a   :  { %1533 = shalt.err (!%p1530_p4)
}
 0x96b   :  { %1069 = dma.vmem_to_hbm [thread:$0]  %s1067_s12, 64, %s2135_s5, [#allocation4]  }
 0x96c   :  { %1578 = dma.done.wait [#allocation4], 64  }
 0x96d   :  { %1579 = vsyncadd [#allocation4], 4294967232 }
 0x96e   :  { %1073 = vsyncpa [#allocation3], 1 }
 0x96f   :  { %1074 = vsyncpa [#allocation6], 1 }
 0x970   :  { %1075 = vsyncpa [#allocation4], 1 }

</bundles_post_ra>
